<compile_context>
chip_gen: v7x
topology: tpu7x:2x2x1
jax: 0.10.0
libtpu: 0.0.40
codegen_flags: <defaults>
</compile_context>

<pallas_src>
import functools

import numpy as np
import jax
import jax.numpy as jnp
from jax import lax
from jax.experimental import pallas as pl
from jax.experimental.pallas import tpu as pltpu


def _primary_caps_kernel(patches_ref, w_ref, b_ref, sel_ref, selt_ref,
                         out_ref, acc_ref):
    """Fused conv-as-matmul for all capsules + bias + squash.

    patches_ref: [TM, TK]   bf16 im2col rows (one row per (b, h, w))
    w_ref:       [TK, NC]   bf16 fused weights (column blocks per capsule)
    b_ref:       [1,  NC]   f32 fused bias row
    sel_ref:     [NC, Cout] f32 0/1 selection matrix (capsule-group reduce)
    selt_ref:    [Cout, NC] f32 its transpose (broadcast scale back)
    out_ref:     [TM, NC]   f32 lane-dense output, single full-tile store
    acc_ref:     [TM, NC]   f32 accumulator scratch (resident across K steps)
    """
    k = pl.program_id(1)

    @pl.when(k == 0)
    def _():
        acc_ref[...] = jnp.zeros_like(acc_ref)

    # One fused bf16 MXU matmul for all capsules, accumulated in f32.
    acc_ref[...] += jnp.dot(patches_ref[...], w_ref[...],
                            preferred_element_type=jnp.float32)

    @pl.when(k == pl.num_programs(1) - 1)
    def _():
        u = acc_ref[...] + b_ref[...]                         # [TM, NC]

        # |s|^2 per capsule group: (u*u) @ sel on the MXU -> [TM, Cout].
        norm_sq = jnp.dot(u * u, sel_ref[...],
                          preferred_element_type=jnp.float32)

        # squash scale: |s|^2/(1+|s|^2)/sqrt(|s|^2+eps)  (EUP recip + rsqrt)
        scale = norm_sq * pl.reciprocal(1.0 + norm_sq, approx=True)
        scale = scale * lax.rsqrt(norm_sq + 1e-8)

        # Broadcast the per-(row, cout) scale across capsules via MXU, store once.
        out_ref[...] = (u * jnp.dot(scale, selt_ref[...],
                                    preferred_element_type=jnp.float32)
                        ).astype(out_ref.dtype)


def _pick_m_tile(bp):
    """Largest M tile that divides bp when bp is big (no pad copy), otherwise the
    largest tile that still gives >= 2 grid steps (keeps both v7x TCs busy)."""
    if bp >= 1024:
        for c in (512, 256, 128):
            if bp % c == 0:
                return c
        return 512
    for c in (512, 256, 128, 64, 32, 16, 8):
        if -(-bp // c) >= 2:
            return c
    return 8


@functools.partial(jax.jit, static_argnums=3)
def primary_capsule_forward(x, weights, biases, stride):
    """x: [B, Cin, H, W] f32 (NCHW). weights: [num_caps, Cout, Cin, K, K].
    biases: [num_caps, Cout]. Returns [B, Cout*Hout*Wout, num_caps]."""
    B, Cin, H, W = x.shape
    num_caps, Cout, _, K, _ = weights.shape
    Hout = (H - K) // stride + 1
    Wout = (W - K) // stride + 1
    P = Hout * Wout
    Kdim = Cin * K * K
    NC = num_caps * Cout
    BP = B * P

    # --- glue: im2col built directly as [B*P, Kdim] rows, in bf16 ---
    # column order (ci, kh, kw) matches PyTorch OIHW weight flattening.
    # TODO(synk): at real CapsNet scale, gather these rows in-kernel from x
    # (memory_space=pl.ANY + manual DMA) instead of materializing im2col in HBM.
    xn = jnp.transpose(x, (0, 2, 3, 1)).astype(jnp.bfloat16)   # [B, H, W, Cin]
    cols = []
    for kh in range(K):
        for kw in range(K):
            cols.append(xn[:, kh:kh + stride * (Hout - 1) + 1:stride,
                             kw:kw + stride * (Wout - 1) + 1:stride, :])
    patches = jnp.stack(cols, axis=-1)               # [B, Hout, Wout, Cin, K*K]
    patches = patches.reshape(BP, Kdim)              # [B*P, Kdim] bf16

    # Fused weight matrix [Kdim, NC] (column blocks per capsule) + bias row.
    w_fused = (weights.reshape(num_caps, Cout, Kdim).transpose(2, 0, 1)
               .reshape(Kdim, NC).astype(jnp.bfloat16))
    b_fused = biases.reshape(1, NC).astype(jnp.float32)

    # 0/1 selection matrices (compile-time constants): sel[r, j] = 1 iff
    # column r = c*Cout + j belongs to cout-index j.
    sel_np = np.zeros((NC, Cout), np.float32)
    sel_np[np.arange(NC), np.arange(NC) % Cout] = 1.0
    sel = jnp.asarray(sel_np)                        # [NC, Cout]
    sel_t = jnp.asarray(sel_np.T.copy())             # [Cout, NC]

    # --- tiling: M (rows, parallel) x K (reduction, arbitrary) ---
    TM = _pick_m_tile(BP)
    Mpad = -(-BP // TM) * TM
    if Kdim <= 1024:
        TK, Kpad = Kdim, Kdim
    else:
        TK = 512
        Kpad = -(-Kdim // TK) * TK
    if Mpad != BP or Kpad != Kdim:
        patches = jnp.pad(patches, ((0, Mpad - BP), (0, Kpad - Kdim)))
    if Kpad != Kdim:
        w_fused = jnp.pad(w_fused, ((0, Kpad - Kdim), (0, 0)))

    grid = (Mpad // TM, Kpad // TK)

    # Per-step VMEM (double-buffered bf16 inputs, f32 out + accumulator + sel).
    vmem_bytes = (2 * TM * TK * 2          # patches tiles (x2 buffers, bf16)
                  + 2 * TK * NC * 2        # weight tiles (x2 buffers, bf16)
                  + 2 * NC * 4             # bias
                  + 2 * 2 * NC * Cout * 4  # sel / sel_t
                  + 2 * TM * NC * 4        # output tiles (x2 buffers, f32)
                  + TM * NC * 4)           # accumulator scratch
    vmem_limit = int(min(max(2 * vmem_bytes, 16 << 20), 48 << 20))

    out = pl.pallas_call(
        _primary_caps_kernel,
        out_shape=jax.ShapeDtypeStruct((Mpad, NC), jnp.float32),
        grid_spec=pltpu.PrefetchScalarGridSpec(
            num_scalar_prefetch=0,
            grid=grid,
            in_specs=[
                pl.BlockSpec((TM, TK), lambda i, k: (i, k)),    # im2col row tile
                pl.BlockSpec((TK, NC), lambda i, k: (k, 0)),    # fused weight tile
                pl.BlockSpec((1, NC), lambda i, k: (0, 0)),     # fused bias (invariant)
                pl.BlockSpec((NC, Cout), lambda i, k: (0, 0)),  # sel (invariant)
                pl.BlockSpec((Cout, NC), lambda i, k: (0, 0)),  # sel^T (invariant)
            ],
            out_specs=pl.BlockSpec((TM, NC), lambda i, k: (i, 0)),
            scratch_shapes=[pltpu.VMEM((TM, NC), jnp.float32)],
        ),
        compiler_params=pltpu.CompilerParams(
            dimension_semantics=("parallel", "arbitrary"),
            vmem_limit_bytes=vmem_limit),
    )(patches, w_fused, b_fused, sel, sel_t)

    # --- glue: rows (b, h, w) / cols (capsule, cout) -> PyTorch layout
    # [B, Cout*Hout*Wout, num_caps] (NCHW conv output flattened (cout, h, w),
    # capsules concatenated on the last axis).
    u = out[:BP].reshape(B, P, num_caps, Cout)
    u = u.transpose(0, 3, 1, 2).reshape(B, Cout * P, num_caps)
    return u


def _reference(x, weights, biases, stride):
    """Pure-JAX reference (per-capsule conv + squash), mirrors PyTorch semantics."""
    num_caps = weights.shape[0]
    outs = []
    for c in range(num_caps):
        y = lax.conv_general_dilated(
            x, weights[c], window_strides=(stride, stride), padding="VALID",
            dimension_numbers=("NCHW", "OIHW", "NCHW"))
        y = y + biases[c][None, :, None, None]
        outs.append(y.reshape(x.shape[0], -1, 1))
    u = jnp.concatenate(outs, axis=-1)               # [B, N, num_caps]
    sq = jnp.sum(u * u, axis=-1, keepdims=True)
    return (sq / (1.0 + sq)) * u / jnp.sqrt(sq + 1e-8)


if __name__ == "__main__":
    # Small shapes consistent with the module's __init__ arguments.
    B, Cin, H, W = 2, 4, 16, 16
    Cout, K, stride, num_caps = 32, 3, 2, 8

    key = jax.random.PRNGKey(0)
    kx, kw, kb = jax.random.split(key, 3)
    x = jax.random.normal(kx, (B, Cin, H, W), dtype=jnp.float32)
    weights = 0.1 * jax.random.normal(kw, (num_caps, Cout, Cin, K, K), dtype=jnp.float32)
    biases = 0.1 * jax.random.normal(kb, (num_caps, Cout), dtype=jnp.float32)

    out = primary_capsule_forward(x, weights, biases, stride)
    out = jax.block_until_ready(out)

    ref = _reference(x, weights, biases, stride)
    assert out.shape == ref.shape, (out.shape, ref.shape)
    # bf16 matmul operands + approx reciprocal -> relaxed tolerance vs f32 ref.
    max_err = float(jnp.max(jnp.abs(out - ref)))
    assert jnp.allclose(out, ref, rtol=2e-2, atol=2e-2), max_err

    print("KERNEL_OK")
</pallas_src>

<mosaic_0001>
module attributes {stable_mosaic.version = 11 : i64} {
  func.func @_primary_caps_kernel(%arg0: i32, %arg1: i32, %arg2: memref<64x36xbf16, #tpu.memory_space<vmem>>, %arg3: memref<36x256xbf16, #tpu.memory_space<vmem>>, %arg4: memref<1x256xf32, #tpu.memory_space<vmem>>, %arg5: memref<256x32xf32, #tpu.memory_space<vmem>>, %arg6: memref<32x256xf32, #tpu.memory_space<vmem>>, %arg7: memref<64x256xf32, #tpu.memory_space<vmem>>, %arg8: memref<64x256xf32, #tpu.memory_space<vmem>>) attributes {dimension_semantics = [#tpu.dimension_semantics<parallel>, #tpu.dimension_semantics<arbitrary>], iteration_bounds = array<i64: 2, 1>, scalar_prefetch = 0 : i64, scratch_operands = 1 : i64, tpu.core_type = #tpu.core_type<tc>, window_params = [{transform_indices = @transform_0, window_bounds = array<i64: 64, 36>}, {transform_indices = @transform_1, window_bounds = array<i64: 36, 256>}, {pipeline_mode = #tpu.pipeline_mode<synchronous>, transform_indices = @transform_2, window_bounds = array<i64: 1, 256>}, {pipeline_mode = #tpu.pipeline_mode<synchronous>, transform_indices = @transform_3, window_bounds = array<i64: 256, 32>}, {pipeline_mode = #tpu.pipeline_mode<synchronous>, transform_indices = @transform_4, window_bounds = array<i64: 32, 256>}, {transform_indices = @transform_5, window_bounds = array<i64: 64, 256>}]} {
    %c0_i32 = arith.constant 0 : i32
    %0 = arith.cmpi eq, %arg1, %c0_i32 : i32
    %1 = arith.extui %0 : i1 to i32
    %c0_i32_0 = arith.constant 0 : i32
    %2 = arith.cmpi ne, %1, %c0_i32_0 : i32
    scf.if %2 {
      %cst_10 = arith.constant 0.000000e+00 : f32
      %12 = vector.broadcast %cst_10 : f32 to vector<64x256xf32>
      %c0_11 = arith.constant 0 : index
      %c0_12 = arith.constant 0 : index
      %13 = vector.load %arg8[%c0_11, %c0_12] : memref<64x256xf32, #tpu.memory_space<vmem>>, vector<64x256xf32>
      tpu.vector_store %arg8[%c0_11, %c0_12], %12 {strides = array<i32>} : memref<64x256xf32, #tpu.memory_space<vmem>>, vector<64x256xf32>,
    } else {
    }
    %c0 = arith.constant 0 : index
    %c0_1 = arith.constant 0 : index
    %3 = vector.load %arg8[%c0, %c0_1] : memref<64x256xf32, #tpu.memory_space<vmem>>, vector<64x256xf32>
    %c0_2 = arith.constant 0 : index
    %c0_3 = arith.constant 0 : index
    %4 = vector.load %arg2[%c0_2, %c0_3] : memref<64x36xbf16, #tpu.memory_space<vmem>>, vector<64x36xbf16>
    %c0_4 = arith.constant 0 : index
    %c0_5 = arith.constant 0 : index
    %5 = vector.load %arg3[%c0_4, %c0_5] : memref<36x256xbf16, #tpu.memory_space<vmem>>, vector<36x256xbf16>
    %cst = arith.constant dense<0.000000e+00> : vector<64x256xf32>
    %6 = tpu.matmul %4, %5, %cst {dimension_numbers = #tpu.dot_dimension_numbers<[1], [0], [0], [1], [0, 0, 1, 1], [], []>} : vector<64x36xbf16>, vector<36x256xbf16>, vector<64x256xf32> -> vector<64x256xf32>
    %7 = arith.addf %3, %6 : vector<64x256xf32>
    %c0_6 = arith.constant 0 : index
    %c0_7 = arith.constant 0 : index
    %8 = vector.load %arg8[%c0_6, %c0_7] : memref<64x256xf32, #tpu.memory_space<vmem>>, vector<64x256xf32>
    tpu.vector_store %arg8[%c0_6, %c0_7], %7 {strides = array<i32>} : memref<64x256xf32, #tpu.memory_space<vmem>>, vector<64x256xf32>,
    %c0_i32_8 = arith.constant 0 : i32
    %9 = arith.cmpi eq, %arg1, %c0_i32_8 : i32
    %10 = arith.extui %9 : i1 to i32
    %c0_i32_9 = arith.constant 0 : i32
    %11 = arith.cmpi ne, %10, %c0_i32_9 : i32
    scf.if %11 {
      %c0_10 = arith.constant 0 : index
      %c0_11 = arith.constant 0 : index
      %12 = vector.load %arg8[%c0_10, %c0_11] : memref<64x256xf32, #tpu.memory_space<vmem>>, vector<64x256xf32>
      %c0_12 = arith.constant 0 : index
      %c0_13 = arith.constant 0 : index
      %13 = vector.load %arg4[%c0_12, %c0_13] : memref<1x256xf32, #tpu.memory_space<vmem>>, vector<1x256xf32>
      %14 = vector.broadcast %13 : vector<1x256xf32> to vector<64x256xf32>
      %15 = arith.addf %12, %14 : vector<64x256xf32>
      %16 = arith.mulf %15, %15 : vector<64x256xf32>
      %c0_14 = arith.constant 0 : index
      %c0_15 = arith.constant 0 : index
      %17 = vector.load %arg5[%c0_14, %c0_15] : memref<256x32xf32, #tpu.memory_space<vmem>>, vector<256x32xf32>
      %cst_16 = arith.constant dense<0.000000e+00> : vector<64x32xf32>
      %18 = tpu.matmul %16, %17, %cst_16 {dimension_numbers = #tpu.dot_dimension_numbers<[1], [0], [0], [1], [0, 0, 1, 1], [], []>} : vector<64x256xf32>, vector<256x32xf32>, vector<64x32xf32> -> vector<64x32xf32>
      %cst_17 = arith.constant 1.000000e+00 : f32
      %19 = vector.broadcast %cst_17 : f32 to vector<64x32xf32>
      %20 = arith.addf %19, %18 : vector<64x32xf32>
      %21 = tpu.reciprocal %20 {approx = true} : vector<64x32xf32> -> vector<64x32xf32>
      %22 = arith.mulf %18, %21 : vector<64x32xf32>
      %cst_18 = arith.constant 9.99999993E-9 : f32
      %23 = vector.broadcast %cst_18 : f32 to vector<64x32xf32>
      %24 = arith.addf %18, %23 : vector<64x32xf32>
      %25 = math.rsqrt %24 : vector<64x32xf32>
      %26 = arith.mulf %22, %25 : vector<64x32xf32>
      %c0_19 = arith.constant 0 : index
      %c0_20 = arith.constant 0 : index
      %27 = vector.load %arg6[%c0_19, %c0_20] : memref<32x256xf32, #tpu.memory_space<vmem>>, vector<32x256xf32>
      %cst_21 = arith.constant dense<0.000000e+00> : vector<64x256xf32>
      %28 = tpu.matmul %26, %27, %cst_21 {dimension_numbers = #tpu.dot_dimension_numbers<[1], [0], [0], [1], [0, 0, 1, 1], [], []>} : vector<64x32xf32>, vector<32x256xf32>, vector<64x256xf32> -> vector<64x256xf32>
      %29 = arith.mulf %15, %28 : vector<64x256xf32>
      %c0_22 = arith.constant 0 : index
      %c0_23 = arith.constant 0 : index
      %30 = vector.load %arg7[%c0_22, %c0_23] : memref<64x256xf32, #tpu.memory_space<vmem>>, vector<64x256xf32>
      tpu.vector_store %arg7[%c0_22, %c0_23], %29 {strides = array<i32>} : memref<64x256xf32, #tpu.memory_space<vmem>>, vector<64x256xf32>,
    } else {
    }
    return
  }
  func.func @transform_0(%arg0: i32, %arg1: i32) -> (i32, i32) {
    %c0_i32 = arith.constant 0 : i32
    return %arg0, %arg1 : i32, i32
  }
  func.func @transform_1(%arg0: i32, %arg1: i32) -> (i32, i32) {
    %c0_i32 = arith.constant 0 : i32
    %c0_i32_0 = arith.constant 0 : i32
    return %arg1, %c0_i32 : i32, i32
  }
  func.func @transform_2(%arg0: i32, %arg1: i32) -> (i32, i32) {
    %c0_i32 = arith.constant 0 : i32
    %c0_i32_0 = arith.constant 0 : i32
    %c0_i32_1 = arith.constant 0 : i32
    return %c0_i32, %c0_i32_0 : i32, i32
  }
  func.func @transform_3(%arg0: i32, %arg1: i32) -> (i32, i32) {
    %c0_i32 = arith.constant 0 : i32
    %c0_i32_0 = arith.constant 0 : i32
    %c0_i32_1 = arith.constant 0 : i32
    return %c0_i32, %c0_i32_0 : i32, i32
  }
  func.func @transform_4(%arg0: i32, %arg1: i32) -> (i32, i32) {
    %c0_i32 = arith.constant 0 : i32
    %c0_i32_0 = arith.constant 0 : i32
    %c0_i32_1 = arith.constant 0 : i32
    return %c0_i32, %c0_i32_0 : i32, i32
  }
  func.func @transform_5(%arg0: i32, %arg1: i32) -> (i32, i32) {
    %c0_i32 = arith.constant 0 : i32
    %c0_i32_0 = arith.constant 0 : i32
    return %arg0, %c0_i32 : i32, i32
  }
}

</mosaic_0001>

<bundles_post_ra>
// kernel: primary_capsule_forward.1
= control target key start
LH: loop header
LB: loop body
LE: loop exit
PB: predicated region body
PF: predicated region fallthrough
CT: control target
= control target key end

     0   :  { %s1272_s18 = smov 0   ;;  %s1274_s19 = smov 0   ;;  %s1578_s0 = inlined_call_operand.vmem [shape: bf16[128,36], index: 0, kind: input, shape index: {}]   ;;  %s1579_s1 = inlined_call_operand.vmem [shape: bf16[36,256], index: 1, kind: input, shape index: {}]   ;;  %s1580_s2 = inlined_call_operand.vmem [shape: f32[1,256], index: 2, kind: input, shape index: {}]   ;;  %s1581_s3 = inlined_call_operand.vmem [shape: f32[256,32], index: 3, kind: input, shape index: {}]   ;;  %s1582_s4 = inlined_call_operand.vmem [shape: f32[32,256], index: 4, kind: input, shape index: {}]   ;;  %s1583_s5 = inlined_call_operand.vmem [shape: f32[128,256], index: 5, kind: output, shape index: {}]  }
   0x1   :  { %s1276_s20 = smov 0  }
   0x2 LB: > { %s27_s21 = sadd.s32 1, %s1234_s19  ;;  %p1014_p0 = scmp.ge.s32.totalorder %s1238_s20, 1  ;;  %s1238_s20 = sphi %s1276_s20, %s15_s20   ;;  %s1234_s19 = sphi %s1274_s19, %s1585_s19   ;;  %s1230_s18 = sphi %s1272_s18, %s1584_s18  }
   0x3   : > { %p29_p1 = scmp.ge.s32.totalorder %s27_s21, 2  ;;  %p217_p2 = scmp.lt.s32.totalorder %s1238_s20, 3 }
   0x5   : > { %s1587_s21 = smov (%p29_p1, %s27_s21), 0  ;;  %p218_p3 = pnand %p1014_p0, %p217_p2 }
   0x6   : > { %v1172_v0 = vld [vmem:[%s1579_s1 + $0x4] ss:$8 sps:$4 sm:$0xff] (!%p218_p3)   ;;  %v1174_v1 = vld [vmem:[%s1579_s1] ss:$8 sps:$4 sm:$0xff] (!%p218_p3)   ;;  %v1240_v2 = vmov (!%p218_p3), 0   ;;  %s1015_s26 = sshll.u32 (!%p218_p3), %s1230_s18, 3 }
   0x7   : > { %221 = sbr.rel (%p218_p3) target bundleno = 713 (0x2c9), region = 40  ;;  %425 = vmatprep.mubr.bf16.mxu0 (!%p218_p3), %v1240_v2  ;;  %393 = vmatprep.subr.bf16.mxu0 (!%p218_p3), %v1172_v0  ;;  %v1175_v3 = vld [vmem:[%s1579_s1 + $0x14] ss:$8 sps:$4 sm:$0xff] (!%p218_p3)   ;;  %v1177_v4 = vld [vmem:[%s1579_s1 + $0x10] ss:$8 sps:$4 sm:$0xff] (!%p218_p3)   ;;  %p256_p4 = scmp.lt.s32.totalorder (!%p218_p3), %s1015_s26, 15 }
   0x8   : > { %v327_v5 = vld [vmem:[%s1579_s1 + $0x20] sm:$0x33] (!%p218_p3)  ;;  %394 = vmatpush1.bf16.msra.mxu0 (!%p218_p3), %v1174_v1  ;;  %v578_v7 = vld [vmem:[%s1581_s3 + $0x88] sm:$0xff] (!%p218_p3)  ;;  %v579_v13 = vld [vmem:[%s1581_s3 + $0x90] sm:$0xff] (!%p218_p3)  ;;  %vm386_vm0 = vcmask (!%p218_p3), 1041408   ;;  %vm373_vm1 = vcmask (!%p218_p3), 293888  }
   0x9   : > { %v577_v6 = vld [vmem:[%s1581_s3 + $0x80] sm:$0xff] (!%p218_p3)  ;;  %395 = vmatprep.subr.bf16.mxu0 (!%p218_p3), %v1175_v3  ;;  %v1029_v9 = vcombine.high (!%p218_p3), %v327_v5, %v327_v5  ;;  %v1028_v10 = vcombine.low (!%p218_p3), %v327_v5, %v327_v5  ;;  %v562_v12 = vld [vmem:[%s1581_s3 + $0x8] sm:$0xff] (!%p218_p3)  ;;  %v580_v14 = vld [vmem:[%s1581_s3 + $0x98] sm:$0xff] (!%p218_p3)  ;;  %v519_v3 = vlaneseq (!%p218_p3)  ;;  %vm754_vm2 = vcmask (!%p218_p3), 261120  }
   0xa   : > { %v561_v8 = vld [vmem:[%s1581_s3] sm:$0xff] (!%p218_p3)  ;;  %v1102_v11 = vpack.c.bf16 (!%p218_p3), %v578_v7, %v577_v6  ;;  %v1106_v16 = vpack.c.bf16 (!%p218_p3), %v580_v14, %v579_v13  ;;  %v563_v17 = vld [vmem:[%s1581_s3 + $0x10] sm:$0xff] (!%p218_p3)  ;;  %v564_v18 = vld [vmem:[%s1581_s3 + $0x18] sm:$0xff] (!%p218_p3) }
   0xb   : > { %v1104_v15 = vpack.c.bf16 (!%p218_p3), %v562_v12, %v561_v8  ;;  %v581_v19 = vld [vmem:[%s1581_s3 + $0xa0] sm:$0xff] (!%p218_p3)  ;;  %v582_v20 = vld [vmem:[%s1581_s3 + $0xa8] sm:$0xff] (!%p218_p3)  ;;  %v1108_v21 = vpack.c.bf16 (!%p218_p3), %v564_v18, %v563_v17  ;;  %v388_v22 = vsel (!%p218_p3), %vm386_vm0, %v1028_v10, 0  ;;  %v583_v26 = vld [vmem:[%s1581_s3 + $0xb0] sm:$0xff] (!%p218_p3) }
   0xc   : > { %1103 = vmatprep.subr.bf16.mxu1 (!%p218_p3), %v1102_v11  ;;  %396 = vmatpush1.bf16.msra.mxu0 (!%p218_p3), %v1177_v4  ;;  %v1110_v23 = vpack.c.bf16 (!%p218_p3), %v582_v20, %v581_v19  ;;  %v565_v24 = vld [vmem:[%s1581_s3 + $0x20] sm:$0xff] (!%p218_p3)  ;;  %v566_v25 = vld [vmem:[%s1581_s3 + $0x28] sm:$0xff] (!%p218_p3)  ;;  %v584_v27 = vld [vmem:[%s1581_s3 + $0xb8] sm:$0xff] (!%p218_p3)  ;;  %v520_v4 = vshrl.u32 (!%p218_p3), %v519_v3, 7 }
   0xd   : > { %1105 = vmatpush3.bf16.msra.mxu1 (!%p218_p3), %v1104_v15  ;;  %1030 = vmatprep.subr.msk.bf16.mxu0 (!%p218_p3), %vm386_vm0, %v1029_v9  ;;  %v1112_v29 = vpack.c.bf16 (!%p218_p3), %v566_v25, %v565_v24  ;;  %v567_v30 = vld [vmem:[%s1581_s3 + $0x30] sm:$0xff] (!%p218_p3)  ;;  %v1114_v31 = vpack.c.bf16 (!%p218_p3), %v584_v27, %v583_v26  ;;  %v568_v32 = vld [vmem:[%s1581_s3 + $0x38] sm:$0xff] (!%p218_p3)  ;;  %v585_v33 = vld [vmem:[%s1581_s3 + $0xc0] sm:$0xff] (!%p218_p3) }
   0xe   : > { %s1589_s26 = smov (!%p256_p4, %s1015_s26), 15  ;;  %1107 = vmatprep.subr.bf16.mxu1 %v1106_v16  ;;  %v586_v34 = vld [vmem:[%s1581_s3 + $0xc8] sm:$0xff]  ;;  %v1116_v35 = vpack.c.bf16 %v568_v32, %v567_v30  ;;  %v569_v37 = vld [vmem:[%s1581_s3 + $0x40] sm:$0xff]  ;;  %v587_v39 = vld [vmem:[%s1581_s3 + $0xd0] sm:$0xff]  ;;  %v521_v5 = vsub.s32 0, %v520_v4  ;;  %v525_v7 = vsub.s32 1, %v520_v4 }
   0xf   : > { %s1016_s7 = sshll.u32 %s1589_s26, 2  ;;  %v1118_v36 = vpack.c.bf16 %v586_v34, %v585_v33  ;;  %v570_v38 = vld [vmem:[%s1581_s3 + $0x48] sm:$0xff]  ;;  %v588_v40 = vld [vmem:[%s1581_s3 + $0xd8] sm:$0xff]  ;;  %v571_v44 = vld [vmem:[%s1581_s3 + $0x50] sm:$0xff]  ;;  %s1045_s11 = sshll.u32 %s1589_s26, 4 }
  0x10   : > { %s1345_s10 = scalar_lea.vmem %s1578_s0, %s1016_s7  ;;  %398 = vmatpush1.bf16.msra.mxu0 %v388_v22  ;;  %v1120_v42 = vpack.c.bf16 %v570_v38, %v569_v37  ;;  %v1122_v43 = vpack.c.bf16 %v588_v40, %v587_v39  ;;  %v572_v45 = vld [vmem:[%s1581_s3 + $0x58] sm:$0xff]  ;;  %v589_v46 = vld [vmem:[%s1581_s3 + $0xe0] sm:$0xff]  ;;  %v590_v47 = vld [vmem:[%s1581_s3 + $0xe8] sm:$0xff]  ;;  %s1535_s14 = scalar_lea.vmem %s1583_s5, %s1045_s11 }
  0x11   : > { %v1180_v28 = vld [vmem:[%s1345_s10] sm:$0xff]   ;;  %1109 = vmatpush3.bf16.msra.mxu1 %v1108_v21  ;;  %v1181_v41 = vld [vmem:[%s1345_s10 + $0x8] sm:$0xff]   ;;  %v1124_v48 = vpack.c.bf16 %v572_v45, %v571_v44  ;;  %v1126_v49 = vpack.c.bf16 %v590_v47, %v589_v46  ;;  %v1182_v50 = vld [vmem:[%s1345_s10 + $0x10] sm:$0xff]  }
  0x12   : > { %1111 = vmatprep.subr.bf16.mxu1 %v1110_v23  ;;  %v1183_v51 = vld [vmem:[%s1345_s10 + $0x18] sm:$0xff]   ;;  %v573_v52 = vld [vmem:[%s1581_s3 + $0x60] sm:$0xff]  ;;  %v574_v53 = vld [vmem:[%s1581_s3 + $0x68] sm:$0xff] }
  0x13   : > { %1031 = vmatmul.mubr.msk.bf16.vlgmr.msra.gmra.mrb[0].mxu0 %vm373_vm1, %v1180_v28  ;;  %v1128_v54 = vpack.c.bf16 %v574_v53, %v573_v52  ;;  %v591_v55 = vld [vmem:[%s1581_s3 + $0xf0] sm:$0xff]  ;;  %v592_v56 = vld [vmem:[%s1581_s3 + $0xf8] sm:$0xff]  ;;  %v747_v61 = vld [vmem:[%s1582_s4 + $0x8] sm:$0xff] }
  0x14   : > { %435 = vmatprep.mubr.bf16.mxu0 %v1240_v2  ;;  %v1130_v57 = vpack.c.bf16 %v592_v56, %v591_v55  ;;  %v575_v58 = vld [vmem:[%s1581_s3 + $0x70] sm:$0xff]  ;;  %v576_v59 = vld [vmem:[%s1581_s3 + $0x78] sm:$0xff]  ;;  %v746_v63 = vld [vmem:[%s1582_s4] sm:$0xff] }
  0x15   : > { %1113 = vmatpush3.bf16.msra.mxu1 %v1112_v29  ;;  %v1132_v60 = vpack.c.bf16 %v576_v59, %v575_v58  ;;  %v749_v62 = vld [vmem:[%s1582_s4 + $0x18] sm:$0xff]  ;;  %v748_v1 = vld [vmem:[%s1582_s4 + $0x10] sm:$0xff]  ;;  %v517_v6 = vld [vmem:[%s1580_s2] sm:$0x3] }
  0x16   : > { %1115 = vmatprep.subr.bf16.mxu1 %v1114_v31  ;;  %v1134_v0 = vpack.c.bf16 %v749_v62, %v747_v61  ;;  %v522_v8 = vrot.slane %v517_v6, %v521_v5  ;;  %v526_v9 = vrot.slane %v517_v6, %v525_v7  ;;  %v751_v58 = vld [vmem:[%s1582_s4 + $0x28] sm:$0xff]  ;;  %v753_v59 = vld [vmem:[%s1582_s4 + $0x38] sm:$0xff]  ;;  %v750_v61 = vld [vmem:[%s1582_s4 + $0x20] sm:$0xff] }
  0x17   : > { %v752_v62 = vld [vmem:[%s1582_s4 + $0x30] sm:$0xff] }
  0x18   : > { %1135 = vmatprep.subr.bf16.mxu0 %v1134_v0 }
  0x19   : > { %1117 = vmatpush3.bf16.msra.mxu1 %v1116_v35 }
  0x1a   : > { %1119 = vmatprep.subr.bf16.mxu1 %v1118_v36 }
  0x1b   : > { %1032 = vmatmul.mubr.msk.bf16.gmra.mrb[4].mxu0 %vm373_vm1, %v1181_v41 }
  0x1c   : > { %445 = vmatprep.mubr.bf16.mxu0 %v1240_v2 }
  0x1d   : > { %1121 = vmatpush3.bf16.msra.mxu1 %v1120_v42 }
  0x1e   : > { %1123 = vmatprep.subr.bf16.mxu1 %v1122_v43 }
  0x21   : > { %1125 = vmatpush3.bf16.msra.mxu1 %v1124_v48 }
  0x22   : > { %1127 = vmatprep.subr.bf16.mxu1 %v1126_v49 }
  0x23   : > { %1033 = vmatmul.mubr.msk.bf16.gmra.mrb[8].mxu0 %vm373_vm1, %v1182_v50 }
  0x24   : > { %455 = vmatprep.mubr.bf16.mxu0 %v1240_v2  ;;  %v1136_v2 = vpack.c.bf16 %v748_v1, %v746_v63  ;;  %v1140_v63 = vpack.c.bf16 %v752_v62, %v750_v61 }
  0x25   : > { %1129 = vmatpush3.bf16.msra.mxu1 %v1128_v54 }
  0x26   : > { %1131 = vmatprep.subr.bf16.mxu1 %v1130_v57  ;;  %1137 = vmatpush1.bf16.msra.mxu0 %v1136_v2 }
  0x29   : > { %1133 = vmatpush3.bf16.msra.mxu1 %v1132_v60  ;;  %v1138_v60 = vpack.c.bf16 %v753_v59, %v751_v58 }
  0x2a   : > { %1142 = vmatprep.subr.bf16.mxu1 %v1134_v0  ;;  %v1241_v0 = vmov 0.0  }
  0x2b   : > { %1034 = vmatmul.mubr.msk.bf16.gmra.mrb[12].mxu0 %vm373_vm1, %v1183_v51  ;;  %1139 = vmatprep.subr.bf16.mxu0 %v1138_v60 }
  0x2c   : > { %1141 = vmatpush1.bf16.msra.mxu0 %v1140_v63  ;;  %843 = vmatprep.mubr.f32.mxu0 %v1241_v0 }
  0xe6   : > { %v427_v10 = vpop.f32.mrb[0].mxu0 }
  0xe7   : > { %v1439_v11 = vadd.f32 %v522_v8, %v427_v10  ;;  %v429_v12 = vpop.f32.mrb[1].mxu0 }
  0xe8   : > { %v1441_v13 = vadd.f32 %v526_v9, %v429_v12  ;;  %v431_v14 = vpop.f32.mrb[2].mxu0 }
  0xe9   : > { %v433_v15 = vpop.f32.mrb[3].mxu0  ;;  %v545_v18 = vmul.f32 %v1439_v11, %v1439_v11  ;;  %v1449_v19 = vadd.f32 %v522_v8, %v431_v14 }
  0xea   : > { %v1443_v16 = vadd.f32 %v526_v9, %v433_v15  ;;  %v546_v17 = vmul.f32 %v1441_v13, %v1441_v13 }
  0xeb   : > { %v547_v22 = vmul.f32 %v1449_v19, %v1449_v19 }
  0xec   : > { %v548_v20 = vmul.f32 %v1443_v16, %v1443_v16  ;;  %657 = vmatprep.mubr.f32.mxu1 %v546_v17 }
  0xed   : > { %658 = vmatmul.mubr.f32.vlgmr.msra.gmra.mrb[0].mxu1 %v545_v18 }
  0xee   : > { %v437_v21 = vpop.f32.mrb[4].mxu0  ;;  %662 = vmatprep.mubr.f32.mxu1 %v548_v20  ;;  %1144 = vmatpush1.bf16.msra.mxu1 %v1136_v2 }
  0xef   : > { %v1455_v23 = vadd.f32 %v522_v8, %v437_v21  ;;  %v439_v24 = vpop.f32.mrb[5].mxu0  ;;  %1143 = vmatprep.subr.bf16.mxu1 %v1138_v60 }
  0xf0   : > { %v1457_v25 = vadd.f32 %v526_v9, %v439_v24  ;;  %v441_v26 = vpop.f32.mrb[6].mxu0 }
  0xf1   : > { %v443_v27 = vpop.f32.mrb[7].mxu0  ;;  %663 = vmatmul.mubr.f32.gmra.mrb[2].mxu1 %v547_v22  ;;  %v549_v30 = vmul.f32 %v1455_v23, %v1455_v23  ;;  %v1465_v31 = vadd.f32 %v522_v8, %v441_v26 }
  0xf2   : > { %v550_v28 = vmul.f32 %v1457_v25, %v1457_v25  ;;  %v1461_v29 = vadd.f32 %v526_v9, %v443_v27  ;;  %1145 = vmatpush1.bf16.msra.mxu1 %v1140_v63 }
  0xf3   : > { %v551_v34 = vmul.f32 %v1465_v31, %v1465_v31 }
  0xf4   : > { %v552_v32 = vmul.f32 %v1461_v29, %v1461_v29  ;;  %667 = vmatprep.mubr.f32.mxu1 %v550_v28 }
  0xf5   : > { %668 = vmatmul.mubr.f32.gmra.mrb[4].mxu1 %v549_v30 }
  0xf6   : > { %v447_v33 = vpop.f32.mrb[8].mxu0  ;;  %672 = vmatprep.mubr.f32.mxu1 %v552_v32 }
  0xf7   : > { %v1471_v35 = vadd.f32 %v522_v8, %v447_v33  ;;  %v449_v36 = vpop.f32.mrb[9].mxu0 }
  0xf8   : > { %v1473_v37 = vadd.f32 %v526_v9, %v449_v36  ;;  %v451_v38 = vpop.f32.mrb[10].mxu0 }
  0xf9   : > { %v453_v39 = vpop.f32.mrb[11].mxu0  ;;  %673 = vmatmul.mubr.f32.gmra.mrb[6].mxu1 %v551_v34  ;;  %v553_v42 = vmul.f32 %v1471_v35, %v1471_v35  ;;  %v1481_v43 = vadd.f32 %v522_v8, %v451_v38 }
  0xfa   : > { %v554_v40 = vmul.f32 %v1473_v37, %v1473_v37  ;;  %v1477_v41 = vadd.f32 %v526_v9, %v453_v39 }
  0xfb   : > { %v555_v46 = vmul.f32 %v1481_v43, %v1481_v43 }
  0xfc   : > { %v556_v44 = vmul.f32 %v1477_v41, %v1477_v41  ;;  %677 = vmatprep.mubr.f32.mxu1 %v554_v40 }
  0xfd   : > { %678 = vmatmul.mubr.f32.gmra.mrb[8].mxu1 %v553_v42 }
  0xfe   : > { %v457_v45 = vpop.f32.mrb[12].mxu0  ;;  %682 = vmatprep.mubr.f32.mxu1 %v556_v44 }
  0xff   : > { %v1487_v47 = vadd.f32 %v522_v8, %v457_v45  ;;  %v459_v48 = vpop.f32.mrb[13].mxu0 }
 0x100   : > { %v1489_v49 = vadd.f32 %v526_v9, %v459_v48  ;;  %v461_v50 = vpop.f32.mrb[14].mxu0 }
 0x101   : > { %v463_v51 = vpop.f32.mrb[15].mxu0  ;;  %683 = vmatmul.mubr.f32.gmra.mrb[10].mxu1 %v555_v46  ;;  %v557_v54 = vmul.f32 %v1487_v47, %v1487_v47  ;;  %v1497_v55 = vadd.f32 %v522_v8, %v461_v50 }
 0x102   : > { %v558_v52 = vmul.f32 %v1489_v49, %v1489_v49  ;;  %v1493_v53 = vadd.f32 %v526_v9, %v463_v51 }
 0x103   : > { %v559_v57 = vmul.f32 %v1497_v55, %v1497_v55 }
 0x104   : > { %v560_v56 = vmul.f32 %v1493_v53, %v1493_v53  ;;  %687 = vmatprep.mubr.f32.mxu1 %v558_v52 }
 0x105   : > { %688 = vmatmul.mubr.f32.gmra.mrb[12].mxu1 %v557_v54 }
 0x106   : > { %692 = vmatprep.mubr.f32.mxu1 %v560_v56 }
 0x109   : > { %693 = vmatmul.mubr.f32.gmra.mrb[14].mxu1 %v559_v57 }
 0x10a   : > { %885 = vmatprep.mubr.f32.mxu1 %v1241_v0 }
 0x1c0   : > { %v1078_v1 = vpop.f32.mrb[0].mxu1 }
 0x1c1   : > { %v1079_v2 = vpop.f32.mrb[1].mxu1 }
 0x1c2   : > { %v1080_v3 = vadd.f32 %v1079_v2, %v1078_v1 }
 0x1c4   : > { %v698_v4 = vadd.f32 1.0, %v1080_v3  ;;  %v722_v5 = vadd.f32 1e-08, %v1080_v3  ;;  %v1081_v6 = vpop.f32.mrb[2].mxu1 }
 0x1c5   : > { %v1082_v7 = vpop.f32.mrb[3].mxu1 }
 0x1c6   : > { %1184 = vrcp.f32 %v698_v4  ;;  %v1083_v8 = vadd.f32 %v1082_v7, %v1081_v6 }
 0x1c7   : > { %1186 = vrsqrt.f32 %v722_v5 }
 0x1c8   : > { %v699_v9 = vadd.f32 1.0, %v1083_v8  ;;  %v723_v10 = vadd.f32 1e-08, %v1083_v8  ;;  %v1084_v12 = vpop.f32.mrb[4].mxu1 }
 0x1c9   : > { %v1085_v14 = vpop.f32.mrb[5].mxu1 }
 0x1ca   : > { %1188 = vrcp.f32 %v699_v9  ;;  %v1086_v15 = vadd.f32 %v1085_v14, %v1084_v12 }
 0x1cb   : > { %1190 = vrsqrt.f32 %v723_v10 }
 0x1cc   : > { %v700_v17 = vadd.f32 1.0, %v1086_v15  ;;  %v724_v18 = vadd.f32 1e-08, %v1086_v15  ;;  %v1087_v20 = vpop.f32.mrb[6].mxu1 }
 0x1cd   : > { %v1088_v21 = vpop.f32.mrb[7].mxu1 }
 0x1ce   : > { %1192 = vrcp.f32 %v700_v17  ;;  %v1089_v22 = vadd.f32 %v1088_v21, %v1087_v20 }
 0x1cf   : > { %1194 = vrsqrt.f32 %v724_v18 }
 0x1d0   : > { %v1185_v24 = vpop.eup %1184  ;;  %v701_v26 = vadd.f32 1.0, %v1089_v22  ;;  %v725_v27 = vadd.f32 1e-08, %v1089_v22  ;;  %v1090_v28 = vpop.f32.mrb[8].mxu1 }
 0x1d1   : > { %v714_v30 = vmul.f32 %v1185_v24, %v1080_v3  ;;  %v1091_v32 = vpop.f32.mrb[9].mxu1  ;;  %v1187_v33 = vpop.eup %1186 }
 0x1d2   : > { %1196 = vrcp.f32 %v701_v26  ;;  %v1092_v34 = vadd.f32 %v1091_v32, %v1090_v28 }
 0x1d3   : > { %v738_v36 = vmul.f32 %v1187_v33, %v714_v30  ;;  %1198 = vrsqrt.f32 %v725_v27 }
 0x1d4   : > { %v1189_v38 = vpop.eup %1188  ;;  %v702_v39 = vadd.f32 1.0, %v1092_v34  ;;  %v726_v40 = vadd.f32 1e-08, %v1092_v34  ;;  %v1093_v42 = vpop.f32.mrb[10].mxu1 }
 0x1d5   : > { %v715_v44 = vmul.f32 %v1189_v38, %v1083_v8  ;;  %v1094_v45 = vpop.f32.mrb[11].mxu1  ;;  %1035 = vmatmul.mubr.msk.f32.vlgmr.msra.gmra.mrb[16].mxu0 %vm754_vm2, %v738_v36  ;;  %v1191_v46 = vpop.eup %1190 }
 0x1d6   : > { %1200 = vrcp.f32 %v702_v39  ;;  %v1095_v48 = vadd.f32 %v1094_v45, %v1093_v42  ;;  %849 = vmatprep.mubr.f32.mxu0 %v1241_v0 }
 0x1d7   : > { %v739_v50 = vmul.f32 %v1191_v46, %v715_v44  ;;  %1202 = vrsqrt.f32 %v726_v40 }
 0x1d8   : > { %v1193_v51 = vpop.eup %1192  ;;  %v703_v52 = vadd.f32 1.0, %v1095_v48  ;;  %v727_v54 = vadd.f32 1e-08, %v1095_v48  ;;  %v1096_v56 = vpop.f32.mrb[12].mxu1 }
 0x1d9   : > { %v716_v57 = vmul.f32 %v1193_v51, %v1086_v15  ;;  %v1097_v58 = vpop.f32.mrb[13].mxu1  ;;  %1036 = vmatmul.mubr.msk.f32.gmra.mrb[18].mxu0 %vm754_vm2, %v739_v50  ;;  %v1195_v59 = vpop.eup %1194 }
 0x1da   : > { %1204 = vrcp.f32 %v703_v52  ;;  %v1098_v60 = vadd.f32 %v1097_v58, %v1096_v56  ;;  %855 = vmatprep.mubr.f32.mxu0 %v1241_v0 }
 0x1db   : > { %v740_v61 = vmul.f32 %v1195_v59, %v716_v57  ;;  %1206 = vrsqrt.f32 %v727_v54 }
 0x1dc   : > { %v1197_v62 = vpop.eup %1196  ;;  %v704_v63 = vadd.f32 1.0, %v1098_v60  ;;  %v728_v1 = vadd.f32 1e-08, %v1098_v60  ;;  %v1099_v2 = vpop.f32.mrb[14].mxu1 }
 0x1dd   : > { %v717_v3 = vmul.f32 %v1197_v62, %v1089_v22  ;;  %v1100_v4 = vpop.f32.mrb[15].mxu1  ;;  %1037 = vmatmul.mubr.msk.f32.gmra.mrb[20].mxu0 %vm754_vm2, %v740_v61  ;;  %v1199_v5 = vpop.eup %1198 }
 0x1de   : > { %1208 = vrcp.f32 %v704_v63  ;;  %v1101_v6 = vadd.f32 %v1100_v4, %v1099_v2  ;;  %861 = vmatprep.mubr.f32.mxu0 %v1241_v0 }
 0x1df   : > { %v741_v7 = vmul.f32 %v1199_v5, %v717_v3  ;;  %1210 = vrsqrt.f32 %v728_v1 }
 0x1e0   : > { %v1201_v8 = vpop.eup %1200  ;;  %v705_v9 = vadd.f32 1.0, %v1101_v6  ;;  %v729_v10 = vadd.f32 1e-08, %v1101_v6 }
 0x1e1   : > { %v718_v12 = vmul.f32 %v1201_v8, %v1092_v34  ;;  %1038 = vmatmul.mubr.msk.f32.gmra.mrb[22].mxu0 %vm754_vm2, %v741_v7  ;;  %v1203_v14 = vpop.eup %1202 }
 0x1e2   : > { %1212 = vrcp.f32 %v705_v9  ;;  %867 = vmatprep.mubr.f32.mxu0 %v1241_v0 }
 0x1e3   : > { %v742_v15 = vmul.f32 %v1203_v14, %v718_v12  ;;  %1214 = vrsqrt.f32 %v729_v10 }
 0x1e4   : > { %v1205_v17 = vpop.eup %1204 }
 0x1e5   : > { %v719_v18 = vmul.f32 %v1205_v17, %v1095_v48  ;;  %1039 = vmatmul.mubr.msk.f32.gmra.mrb[24].mxu0 %vm754_vm2, %v742_v15  ;;  %v1207_v20 = vpop.eup %1206 }
 0x1e6   : > { %873 = vmatprep.mubr.f32.mxu0 %v1241_v0 }
 0x1e7   : > { %v743_v21 = vmul.f32 %v1207_v20, %v719_v18 }
 0x1e8   : > { %v1209_v22 = vpop.eup %1208 }
 0x1e9   : > { %v720_v24 = vmul.f32 %v1209_v22, %v1098_v60  ;;  %1040 = vmatmul.mubr.msk.f32.gmra.mrb[26].mxu0 %vm754_vm2, %v743_v21  ;;  %v1211_v26 = vpop.eup %1210 }
 0x1ea   : > { %879 = vmatprep.mubr.f32.mxu0 %v1241_v0 }
 0x1eb   : > { %v744_v27 = vmul.f32 %v1211_v26, %v720_v24 }
 0x1ec   : > { %v1213_v28 = vpop.eup %1212 }
 0x1ed   : > { %v721_v30 = vmul.f32 %v1213_v28, %v1101_v6  ;;  %1041 = vmatmul.mubr.msk.f32.gmra.mrb[28].mxu0 %vm754_vm2, %v744_v27  ;;  %v1215_v32 = vpop.eup %1214 }
 0x1ef   : > { %v745_v33 = vmul.f32 %v1215_v32, %v721_v30 }
 0x1f1   : > { %1042 = vmatmul.mubr.msk.f32.vlgmr.msra.gmra.mrb[16].mxu1 %vm754_vm2, %v745_v33 }
 0x2a8   : > { %v845_v0 = vpop.f32.mrb[16].mxu0 }
 0x2a9   : > { %v892_v34 = vmul.f32 %v845_v0, %v1439_v11  ;;  %v847_v36 = vpop.f32.mrb[17].mxu0 }
 0x2aa   : > { %v893_v38 = vmul.f32 %v847_v36, %v1441_v13 }
 0x2ab   : > { %908 = vst [vmem:[%s1535_s14] sm:$0xff] %v892_v34 }
 0x2ac   : > { %909 = vst [vmem:[%s1535_s14 + $0x8] sm:$0xff] %v893_v38  ;;  %v851_v39 = vpop.f32.mrb[18].mxu0 }
 0x2ad   : > { %v894_v40 = vmul.f32 %v851_v39, %v1449_v19  ;;  %v853_v42 = vpop.f32.mrb[19].mxu0 }
 0x2ae   : > { %v895_v44 = vmul.f32 %v853_v42, %v1443_v16 }
 0x2af   : > { %910 = vst [vmem:[%s1535_s14 + $0x10] sm:$0xff] %v894_v40 }
 0x2b0   : > { %911 = vst [vmem:[%s1535_s14 + $0x18] sm:$0xff] %v895_v44  ;;  %v857_v45 = vpop.f32.mrb[20].mxu0 }
 0x2b1   : > { %v896_v11 = vmul.f32 %v857_v45, %v1455_v23  ;;  %v859_v46 = vpop.f32.mrb[21].mxu0 }
 0x2b2   : > { %v897_v13 = vmul.f32 %v859_v46, %v1457_v25 }
 0x2b3   : > { %912 = vst [vmem:[%s1535_s14 + $0x20] sm:$0xff] %v896_v11 }
 0x2b4   : > { %913 = vst [vmem:[%s1535_s14 + $0x28] sm:$0xff] %v897_v13  ;;  %v863_v48 = vpop.f32.mrb[22].mxu0 }
 0x2b5   : > { %v898_v19 = vmul.f32 %v863_v48, %v1465_v31  ;;  %v865_v50 = vpop.f32.mrb[23].mxu0 }
 0x2b6   : > { %v899_v16 = vmul.f32 %v865_v50, %v1461_v29 }
 0x2b7   : > { %914 = vst [vmem:[%s1535_s14 + $0x30] sm:$0xff] %v898_v19 }
 0x2b8   : > { %915 = vst [vmem:[%s1535_s14 + $0x38] sm:$0xff] %v899_v16  ;;  %v869_v51 = vpop.f32.mrb[24].mxu0 }
 0x2b9   : > { %v900_v23 = vmul.f32 %v869_v51, %v1471_v35  ;;  %v871_v52 = vpop.f32.mrb[25].mxu0 }
 0x2ba   : > { %v901_v25 = vmul.f32 %v871_v52, %v1473_v37 }
 0x2bb   : > { %916 = vst [vmem:[%s1535_s14 + $0x40] sm:$0xff] %v900_v23 }
 0x2bc   : > { %917 = vst [vmem:[%s1535_s14 + $0x48] sm:$0xff] %v901_v25  ;;  %v875_v54 = vpop.f32.mrb[26].mxu0 }
 0x2bd   : > { %v902_v31 = vmul.f32 %v875_v54, %v1481_v43  ;;  %v877_v56 = vpop.f32.mrb[27].mxu0 }
 0x2be   : > { %v903_v29 = vmul.f32 %v877_v56, %v1477_v41 }
 0x2bf   : > { %918 = vst [vmem:[%s1535_s14 + $0x50] sm:$0xff] %v902_v31 }
 0x2c0   : > { %919 = vst [vmem:[%s1535_s14 + $0x58] sm:$0xff] %v903_v29  ;;  %v881_v57 = vpop.f32.mrb[28].mxu0 }
 0x2c1   : > { %v904_v58 = vmul.f32 %v881_v57, %v1487_v47  ;;  %v883_v35 = vpop.f32.mrb[29].mxu0 }
 0x2c2   : > { %v905_v59 = vmul.f32 %v883_v35, %v1489_v49 }
 0x2c3   : > { %920 = vst [vmem:[%s1535_s14 + $0x60] sm:$0xff] %v904_v58 }
 0x2c4   : > { %921 = vst [vmem:[%s1535_s14 + $0x68] sm:$0xff] %v905_v59  ;;  %v887_v37 = vpop.f32.mrb[16].mxu1 }
 0x2c5   : > { %v906_v60 = vmul.f32 %v887_v37, %v1497_v55  ;;  %v889_v61 = vpop.f32.mrb[17].mxu1 }
 0x2c6   : > { %v907_v43 = vmul.f32 %v889_v61, %v1493_v53 }
 0x2c7   : > { %922 = vst [vmem:[%s1535_s14 + $0x70] sm:$0xff] %v906_v60 }
 0x2c8   : > { %923 = vst [vmem:[%s1535_s14 + $0x78] sm:$0xff] %v907_v43 }
 0x2c9 PF: > { %s15_s20 = sadd.s32 1, %s1238_s20   ;;  %s1584_s18 = smov %s1234_s19 }
 0x2ca   : > { %p12_p5 = scmp.ge.s32.totalorder %s15_s20, 4   ;;  %s1585_s19 = smov %s1587_s21 }
 0x2cc   :  { %14 = sbr.rel (!%p12_p5) target bundleno = 2 (0x2), region = 81 }

</bundles_post_ra>
